<compile_context>
chip_gen: v7x
topology: tpu7x:2x2x1
jax: 0.10.0
libtpu: 0.0.40
codegen_flags: <defaults>
</compile_context>

<pallas_src>
import functools
import math

import jax
import jax.numpy as jnp
from jax.experimental import pallas as pl
from jax.experimental.pallas import tpu as pltpu


def _device_kind():
    try:
        return jax.devices()[0].device_kind.lower()
    except Exception:
        return ""


def _select_defaults(T):
    # Per-generation defaults (review): v5e keeps TS=256 (MXU ~4.6x slower, step overhead
    # already negligible, no bf16 VPU/EUP); v6e gets TS=512 / 64 MiB; v7x gets TS=512 but a
    # tighter 48 MiB budget because physical VMEM is only 64 MiB.
    kind = _device_kind()
    if "v5" in kind:
        ts, vmem = 256, 32 * 1024 * 1024
    elif "v7" in kind:
        ts, vmem = 512, 48 * 1024 * 1024
    else:  # v6e and anything unrecognized
        ts, vmem = 512, 64 * 1024 * 1024
    return min(ts, T), vmem


def _use_bf16_exp():
    # v6e/v7x have a bf16 EUP path (~2x exp throughput) and the attention inner loop is
    # EUP(exp)-bound there; v5e has no bf16 EUP so keep f32 exp.  m/l/acc stay f32 either way.
    kind = _device_kind()
    return ("v6" in kind) or ("v7" in kind)


def _layernorm(h, g, b, eps=1e-5):
    mu = jnp.mean(h, axis=-1, keepdims=True)
    var = jnp.mean((h - mu) ** 2, axis=-1, keepdims=True)
    return (h - mu) * jax.lax.rsqrt(var + eps) * g + b


def _gelu_tanh(x):
    # matches torch.nn.GELU(approximate='tanh')
    c = math.sqrt(2.0 / math.pi)
    return 0.5 * x * (1.0 + jnp.tanh(c * (x + 0.044715 * x * x * x)))


# --------------------------------------------------------------------------------------
# Kernel 1: LN1 + QKV projection, head-major bf16 outputs.
# --------------------------------------------------------------------------------------
def ln1_qkv_kernel(x_ref, g_ref, b_ref, wqkv_ref, bqkv_ref,
                   q_ref, k_ref, v_ref, *, n_head):
    x = x_ref[0]                                              # (TS, C) f32
    TS, C = x.shape
    D = C // n_head
    h = _layernorm(x, g_ref[0], b_ref[0]).astype(jnp.bfloat16)
    qkv = jnp.dot(h, wqkv_ref[...],
                  preferred_element_type=jnp.float32) + bqkv_ref[0]   # (TS, 3C) f32
    qkv = qkv.astype(jnp.bfloat16)                            # single cast, hoisted out of loop
    # Split into heads once here (per seq tile) so the attention kernel is reshape-free.
    # TODO(synk): for GPT-scale D=64 these per-head stores are 64-lane masked vst's; a fully
    # lane-dense (B, T, 3C) output + per-head BlockSpec split in kernel 2 would remove them,
    # at the cost of a head grid axis there.  Adopt only after a bundle dump shows the store
    # slot saturated.
    for hd in range(n_head):
        q_ref[0, hd, :, :] = qkv[:, 0 * C + hd * D:0 * C + (hd + 1) * D]
        k_ref[0, hd, :, :] = qkv[:, 1 * C + hd * D:1 * C + (hd + 1) * D]
        v_ref[0, hd, :, :] = qkv[:, 2 * C + hd * D:2 * C + (hd + 1) * D]


# --------------------------------------------------------------------------------------
# Kernel 2: flash-style causal attention (online softmax), heads batched.
# --------------------------------------------------------------------------------------
def flash_attn_kernel(q_ref, k_ref, v_ref, o_ref, m_sc, l_sc, acc_sc,
                      *, n_head, scale, exp_dtype):
    qi = pl.program_id(1)
    kv = pl.program_id(2)

    @pl.when(kv == 0)
    def _init():
        m_sc[...] = jnp.full(m_sc.shape, -jnp.inf, jnp.float32)
        l_sc[...] = jnp.zeros(l_sc.shape, jnp.float32)
        acc_sc[...] = jnp.zeros(acc_sc.shape, jnp.float32)

    def _scores():
        # All heads in one batched dot (D is the contracted dim, no explicit transpose).
        return jnp.einsum("htd,hsd->hts", q_ref[0], k_ref[0],
                          preferred_element_type=jnp.float32) * scale   # (H, TS, TS) f32

    def _online_update(s):
        v = v_ref[0]                                          # (H, TS, D) bf16
        m_prev = m_sc[...]                                    # (H, TS, 1) f32
        m_new = jnp.maximum(m_prev, jnp.max(s, axis=-1, keepdims=True))
        # exp runs in bf16 on v6e/v7x (2x EUP path); accumulation stays f32.
        alpha = jnp.exp((m_prev - m_new).astype(exp_dtype)).astype(jnp.float32)
        p = jnp.exp((s - m_new).astype(exp_dtype))
        l_sc[...] = alpha * l_sc[...] + jnp.sum(p.astype(jnp.float32),
                                                axis=-1, keepdims=True)
        acc_sc[...] = alpha * acc_sc[...] + jnp.einsum(
            "hts,hsd->htd", p.astype(v.dtype), v, preferred_element_type=jnp.float32)
        m_sc[...] = m_new

    # Below-diagonal tiles: fully visible, no mask work at all.
    @pl.when(kv < qi)
    def _step_full():
        _online_update(_scores())

    # Diagonal tile: the only one that needs the causal mask; it is also the last
    # contributing tile for this q tile, so normalize and emit the output here.
    @pl.when(kv == qi)
    def _step_diag():
        s = _scores()
        TS = s.shape[1]
        row = jax.lax.broadcasted_iota(jnp.int32, (TS, TS), 0)
        col = jax.lax.broadcasted_iota(jnp.int32, (TS, TS), 1)
        # -1e30 (not -inf) is safe because every row keeps at least its diagonal element;
        # revisit if this kernel is reused with padding/segment masks.
        s = jnp.where((row >= col)[None, :, :], s, -1e30)
        _online_update(s)

        D = acc_sc.shape[-1]
        inv_l = pl.reciprocal(l_sc[...], approx=True)         # EUP slot, effectively free
        for hd in range(n_head):
            o_ref[0, :, hd * D:(hd + 1) * D] = (acc_sc[hd] * inv_l[hd]).astype(o_ref.dtype)


# --------------------------------------------------------------------------------------
# Kernel 3: attention output projection + residual + LN2 + MLP + residual.
# --------------------------------------------------------------------------------------
def proj_mlp_kernel(x_ref, y_ref, wap_ref, bap_ref, ln2_g_ref, ln2_b_ref,
                    wfc_ref, bfc_ref, wmp_ref, bmp_ref, o_ref):
    x = x_ref[0]                                              # (TS, C) f32
    attn = jnp.dot(y_ref[0], wap_ref[...],
                   preferred_element_type=jnp.float32) + bap_ref[0]
    x1 = x + attn                                             # residual 1 (f32)

    h2 = _layernorm(x1, ln2_g_ref[0], ln2_b_ref[0]).astype(jnp.bfloat16)
    f = jnp.dot(h2, wfc_ref[...], preferred_element_type=jnp.float32) + bfc_ref[0]
    f = _gelu_tanh(f)                                         # f32
    m = jnp.dot(f.astype(jnp.bfloat16), wmp_ref[...],
                preferred_element_type=jnp.float32) + bmp_ref[0]
    o_ref[0] = (x1 + m).astype(o_ref.dtype)                   # residual 2


# --------------------------------------------------------------------------------------
# Host-side wrapper.
# --------------------------------------------------------------------------------------
def gpt_block(x, params, n_head, *, seq_tile=None, vmem_limit=None):
    B, T, C = x.shape
    assert C % n_head == 0
    D = C // n_head
    default_ts, default_vmem = _select_defaults(T)
    TS = min(seq_tile, T) if seq_tile is not None else default_ts
    vmem_limit = default_vmem if vmem_limit is None else vmem_limit
    assert T % TS == 0, "sequence length must be divisible by the sequence tile"
    nT = T // TS
    bf16 = jnp.bfloat16
    exp_dtype = bf16 if _use_bf16_exp() else jnp.float32

    ln1_g, ln1_b = params["ln1_g"], params["ln1_b"]
    ln2_g, ln2_b = params["ln2_g"], params["ln2_b"]
    # NOTE: when params are not jit-constants, pre-store bf16 weight copies host-side to
    # avoid this convert traffic per call (minor).
    w_qkv = params["w_qkv"].astype(bf16)
    b_qkv = params["b_qkv"]
    w_ap = params["w_attn_proj"].astype(bf16)
    b_ap = params["b_attn_proj"]
    w_fc = params["w_fc"].astype(bf16)
    b_fc = params["b_fc"]
    w_mp = params["w_mlp_proj"].astype(bf16)
    b_mp = params["b_mlp_proj"]

    def const_spec(shape):
        # Resident weights/params: constant index_map -> fetched once; single-buffer them so
        # the default 2-deep pipeline does not hold two copies in VMEM (frees ~10 MiB in
        # kernel 3 at GPT-2 scale; prerequisite for large TS, critical on v7x's 64 MiB VMEM).
        n = len(shape)
        return pl.BlockSpec(shape, lambda b, i: (0,) * n,
                            pipeline_mode=pl.Buffered(1))

    # ---- kernel 1: LN1 + QKV projection ----
    qkv_struct = jax.ShapeDtypeStruct((B, n_head, T, D), bf16)
    q, k, v = pl.pallas_call(
        functools.partial(ln1_qkv_kernel, n_head=n_head),
        out_shape=(qkv_struct, qkv_struct, qkv_struct),
        grid=(B, nT),
        in_specs=[
            pl.BlockSpec((1, TS, C), lambda b, i: (b, i, 0)),   # x tile
            const_spec((1, C)),                                 # ln1_g
            const_spec((1, C)),                                 # ln1_b
            const_spec((C, 3 * C)),                             # w_qkv (bf16)
            const_spec((1, 3 * C)),                             # b_qkv
        ],
        out_specs=(
            pl.BlockSpec((1, n_head, TS, D), lambda b, i: (b, 0, i, 0)),
            pl.BlockSpec((1, n_head, TS, D), lambda b, i: (b, 0, i, 0)),
            pl.BlockSpec((1, n_head, TS, D), lambda b, i: (b, 0, i, 0)),
        ),
        compiler_params=pltpu.CompilerParams(
            dimension_semantics=("parallel", "parallel"),
            vmem_limit_bytes=vmem_limit),
        cost_estimate=pl.CostEstimate(
            flops=2 * B * T * C * 3 * C,
            transcendentals=0,
            bytes_accessed=B * T * C * 4 + C * 3 * C * 2 + 3 * B * T * C * 2),
    )(x, ln1_g, ln1_b, w_qkv, b_qkv)

    # ---- kernel 2: flash causal attention ----
    # TODO(synk): for large nT (long T / small TS) replace the dense (B, nT, nT) grid with a
    # triangular step list via PrefetchScalarGridSpec so above-diagonal steps are never issued.
    y = pl.pallas_call(
        functools.partial(flash_attn_kernel, n_head=n_head,
                          scale=1.0 / math.sqrt(D), exp_dtype=exp_dtype),
        out_shape=jax.ShapeDtypeStruct((B, T, C), bf16),
        grid=(B, nT, nT),
        in_specs=[
            pl.BlockSpec((1, n_head, TS, D), lambda b, qi, kv: (b, 0, qi, 0)),
            # Clamp kv -> min(kv, qi): skipped above-diagonal steps keep the previous block
            # index, so Pallas issues no DMA for K/V tiles that are never used.  3-deep
            # buffering keeps the (small) K/V DMAs hidden across short diagonal steps.
            pl.BlockSpec((1, n_head, TS, D),
                         lambda b, qi, kv: (b, 0, jnp.minimum(kv, qi), 0),
                         pipeline_mode=pl.Buffered(3)),
            pl.BlockSpec((1, n_head, TS, D),
                         lambda b, qi, kv: (b, 0, jnp.minimum(kv, qi), 0),
                         pipeline_mode=pl.Buffered(3)),
        ],
        out_specs=pl.BlockSpec((1, TS, C), lambda b, qi, kv: (b, qi, 0)),
        scratch_shapes=[
            pltpu.VMEM((n_head, TS, 1), jnp.float32),   # running max
            pltpu.VMEM((n_head, TS, 1), jnp.float32),   # running sum
            pltpu.VMEM((n_head, TS, D), jnp.float32),   # output accumulator
        ],
        compiler_params=pltpu.CompilerParams(
            dimension_semantics=("parallel", "parallel", "arbitrary"),
            vmem_limit_bytes=vmem_limit),
        cost_estimate=pl.CostEstimate(
            flops=2 * B * T * T * C,                    # qk^T + pv, ~halved by causal skip
            transcendentals=B * n_head * T * T // 2,
            bytes_accessed=3 * B * T * C * 2 + B * T * C * 2),
    )(q, k, v)

    # ---- kernel 3: attention projection + residual + LN2 + MLP + residual ----
    out = pl.pallas_call(
        proj_mlp_kernel,
        out_shape=jax.ShapeDtypeStruct((B, T, C), x.dtype),
        grid=(B, nT),
        in_specs=[
            pl.BlockSpec((1, TS, C), lambda b, i: (b, i, 0)),   # x tile (residual stream)
            pl.BlockSpec((1, TS, C), lambda b, i: (b, i, 0)),   # attention heads output
            const_spec((C, C)),          # w_attn_proj (bf16)
            const_spec((1, C)),          # b_attn_proj
            const_spec((1, C)),          # ln2_g
            const_spec((1, C)),          # ln2_b
            const_spec((C, 4 * C)),      # w_fc (bf16)
            const_spec((1, 4 * C)),      # b_fc
            const_spec((4 * C, C)),      # w_mlp_proj (bf16)
            const_spec((1, C)),          # b_mlp_proj
        ],
        out_specs=pl.BlockSpec((1, TS, C), lambda b, i: (b, i, 0)),
        compiler_params=pltpu.CompilerParams(
            dimension_semantics=("parallel", "parallel"),
            vmem_limit_bytes=vmem_limit),
        cost_estimate=pl.CostEstimate(
            flops=2 * B * T * 9 * C * C,
            transcendentals=B * T * 4 * C,
            bytes_accessed=B * T * C * 10 + 9 * C * C * 2),
    )(x, y, w_ap, b_ap, ln2_g, ln2_b, w_fc, b_fc, w_mp, b_mp)
    # TODO(synk): for very large 4*C on v7x, additionally chunk the MLP hidden dim with an
    # extra grid axis instead of shrinking TS.
    return out


# --------------------------------------------------------------------------------------
# Pure-JAX reference (matches the PyTorch Block forward) for validation.
# --------------------------------------------------------------------------------------
def gpt_block_reference(x, params, n_head):
    B, T, C = x.shape
    D = C // n_head

    def ln(h, g, b):
        mu = jnp.mean(h, axis=-1, keepdims=True)
        var = jnp.mean((h - mu) ** 2, axis=-1, keepdims=True)
        return (h - mu) / jnp.sqrt(var + 1e-5) * g + b

    h = ln(x, params["ln1_g"][0], params["ln1_b"][0])
    qkv = h @ params["w_qkv"] + params["b_qkv"][0]
    q, k, v = jnp.split(qkv, 3, axis=-1)
    q = q.reshape(B, T, n_head, D).transpose(0, 2, 1, 3)
    k = k.reshape(B, T, n_head, D).transpose(0, 2, 1, 3)
    v = v.reshape(B, T, n_head, D).transpose(0, 2, 1, 3)
    s = jnp.einsum("bhtd,bhsd->bhts", q, k) / math.sqrt(D)
    mask = jnp.tril(jnp.ones((T, T), dtype=bool))
    s = jnp.where(mask, s, -jnp.inf)
    p = jax.nn.softmax(s, axis=-1)
    y = jnp.einsum("bhts,bhsd->bhtd", p, v).transpose(0, 2, 1, 3).reshape(B, T, C)
    y = y @ params["w_attn_proj"] + params["b_attn_proj"][0]
    x = x + y
    h2 = ln(x, params["ln2_g"][0], params["ln2_b"][0])
    f = h2 @ params["w_fc"] + params["b_fc"][0]
    c = math.sqrt(2.0 / math.pi)
    f = 0.5 * f * (1.0 + jnp.tanh(c * (f + 0.044715 * f ** 3)))
    m = f @ params["w_mlp_proj"] + params["b_mlp_proj"][0]
    return x + m


def init_params(key, n_embd):
    C = n_embd
    ks = jax.random.split(key, 6)
    std = 0.02
    return {
        "ln1_g": jnp.ones((1, C), jnp.float32),
        "ln1_b": jnp.zeros((1, C), jnp.float32),
        "w_qkv": std * jax.random.normal(ks[0], (C, 3 * C), jnp.float32),
        "b_qkv": std * jax.random.normal(ks[1], (1, 3 * C), jnp.float32),
        "w_attn_proj": std * jax.random.normal(ks[2], (C, C), jnp.float32),
        "b_attn_proj": jnp.zeros((1, C), jnp.float32),
        "ln2_g": jnp.ones((1, C), jnp.float32),
        "ln2_b": jnp.zeros((1, C), jnp.float32),
        "w_fc": std * jax.random.normal(ks[3], (C, 4 * C), jnp.float32),
        "b_fc": std * jax.random.normal(ks[4], (1, 4 * C), jnp.float32),
        "w_mlp_proj": std * jax.random.normal(ks[5], (4 * C, C), jnp.float32),
        "b_mlp_proj": jnp.zeros((1, C), jnp.float32),
    }


if __name__ == "__main__":
    key = jax.random.PRNGKey(0)

    # Test 1: original toy shape (single sequence tile).
    B, T, C, n_head = 2, 8, 32, 4
    kx, kp = jax.random.split(key)
    x = jax.random.normal(kx, (B, T, C), jnp.float32)
    params = init_params(kp, C)
    out = jax.block_until_ready(gpt_block(x, params, n_head))
    ref = gpt_block_reference(x, params, n_head)
    assert out.shape == (B, T, C)
    assert jnp.allclose(out, ref, atol=1e-2, rtol=1e-2), (
        f"mismatch vs reference (test 1), max abs err={jnp.max(jnp.abs(out - ref))}")

    # Test 2: multiple sequence tiles to exercise the flash online-softmax / causal skip.
    B2, T2, C2, n_head2 = 2, 32, 128, 4
    kx2, kp2 = jax.random.split(kp)
    x2 = jax.random.normal(kx2, (B2, T2, C2), jnp.float32)
    params2 = init_params(kp2, C2)
    out2 = jax.block_until_ready(gpt_block(x2, params2, n_head2, seq_tile=8))
    ref2 = gpt_block_reference(x2, params2, n_head2)
    assert out2.shape == (B2, T2, C2)
    assert jnp.allclose(out2, ref2, atol=1e-2, rtol=1e-2), (
        f"mismatch vs reference (test 2), max abs err={jnp.max(jnp.abs(out2 - ref2))}")

    print("KERNEL_OK")
</pallas_src>

<mosaic_0001>
module attributes {stable_mosaic.version = 11 : i64} {
  func.func @ln1_qkv_kernel(%arg0: i32, %arg1: i32, %arg2: memref<1x8x32xf32, #tpu.memory_space<vmem>>, %arg3: memref<1x32xf32, #tpu.memory_space<vmem>>, %arg4: memref<1x32xf32, #tpu.memory_space<vmem>>, %arg5: memref<32x96xbf16, #tpu.memory_space<vmem>>, %arg6: memref<1x96xf32, #tpu.memory_space<vmem>>, %arg7: memref<1x4x8x8xbf16, #tpu.memory_space<vmem>>, %arg8: memref<1x4x8x8xbf16, #tpu.memory_space<vmem>>, %arg9: memref<1x4x8x8xbf16, #tpu.memory_space<vmem>>) attributes {dimension_semantics = [#tpu.dimension_semantics<parallel>, #tpu.dimension_semantics<parallel>], iteration_bounds = array<i64: 2, 1>, scalar_prefetch = 0 : i64, scratch_operands = 0 : i64, tpu.core_type = #tpu.core_type<tc>, window_params = [{transform_indices = @transform_0, window_bounds = array<i64: 1, 8, 32>}, {pipeline_mode = #tpu.pipeline_mode<synchronous>, transform_indices = @transform_1, window_bounds = array<i64: 1, 32>}, {pipeline_mode = #tpu.pipeline_mode<synchronous>, transform_indices = @transform_2, window_bounds = array<i64: 1, 32>}, {pipeline_mode = #tpu.pipeline_mode<synchronous>, transform_indices = @transform_3, window_bounds = array<i64: 32, 96>}, {pipeline_mode = #tpu.pipeline_mode<synchronous>, transform_indices = @transform_4, window_bounds = array<i64: 1, 96>}, {transform_indices = @transform_5, window_bounds = array<i64: 1, 4, 8, 8>}, {transform_indices = @transform_6, window_bounds = array<i64: 1, 4, 8, 8>}, {transform_indices = @transform_7, window_bounds = array<i64: 1, 4, 8, 8>}]} {
    %c0 = arith.constant 0 : index
    %c0_0 = arith.constant 0 : index
    %c0_1 = arith.constant 0 : index
    %0 = vector.load %arg2[%c0, %c0_0, %c0_1] : memref<1x8x32xf32, #tpu.memory_space<vmem>>, vector<1x8x32xf32>
    %1 = vector.shape_cast %0 : vector<1x8x32xf32> to vector<8x32xf32>
    %c0_2 = arith.constant 0 : index
    %c0_3 = arith.constant 0 : index
    %2 = vector.load %arg3[%c0_2, %c0_3] : memref<1x32xf32, #tpu.memory_space<vmem>>, vector<1x32xf32>
    %3 = vector.shape_cast %2 : vector<1x32xf32> to vector<32xf32>
    %c0_4 = arith.constant 0 : index
    %c0_5 = arith.constant 0 : index
    %4 = vector.load %arg4[%c0_4, %c0_5] : memref<1x32xf32, #tpu.memory_space<vmem>>, vector<1x32xf32>
    %5 = vector.shape_cast %4 : vector<1x32xf32> to vector<32xf32>
    %cst = arith.constant dense<0.000000e+00> : vector<8xf32>
    %6 = vector.multi_reduction <add>, %1, %cst [1] : vector<8x32xf32> to vector<8xf32>
    %7 = vector.shape_cast %6 : vector<8xf32> to vector<8x1xf32>
    %cst_6 = arith.constant 3.200000e+01 : f32
    %8 = vector.broadcast %cst_6 : f32 to vector<8x1xf32>
    %9 = arith.divf %7, %8 : vector<8x1xf32>
    %10 = vector.broadcast %9 : vector<8x1xf32> to vector<8x32xf32>
    %11 = arith.subf %1, %10 : vector<8x32xf32>
    %12 = arith.mulf %11, %11 : vector<8x32xf32>
    %cst_7 = arith.constant dense<0.000000e+00> : vector<8xf32>
    %13 = vector.multi_reduction <add>, %12, %cst_7 [1] : vector<8x32xf32> to vector<8xf32>
    %14 = vector.shape_cast %13 : vector<8xf32> to vector<8x1xf32>
    %cst_8 = arith.constant 3.200000e+01 : f32
    %15 = vector.broadcast %cst_8 : f32 to vector<8x1xf32>
    %16 = arith.divf %14, %15 : vector<8x1xf32>
    %17 = vector.broadcast %9 : vector<8x1xf32> to vector<8x32xf32>
    %18 = arith.subf %1, %17 : vector<8x32xf32>
    %cst_9 = arith.constant 9.99999974E-6 : f32
    %19 = vector.broadcast %cst_9 : f32 to vector<8x1xf32>
    %20 = arith.addf %16, %19 : vector<8x1xf32>
    %21 = math.rsqrt %20 : vector<8x1xf32>
    %22 = vector.broadcast %21 : vector<8x1xf32> to vector<8x32xf32>
    %23 = arith.mulf %18, %22 : vector<8x32xf32>
    %24 = vector.shape_cast %3 : vector<32xf32> to vector<1x32xf32>
    %25 = vector.broadcast %24 : vector<1x32xf32> to vector<8x32xf32>
    %26 = arith.mulf %23, %25 : vector<8x32xf32>
    %27 = vector.shape_cast %5 : vector<32xf32> to vector<1x32xf32>
    %28 = vector.broadcast %27 : vector<1x32xf32> to vector<8x32xf32>
    %29 = arith.addf %26, %28 : vector<8x32xf32>
    %30 = arith.truncf %29 : vector<8x32xf32> to vector<8x32xbf16>
    %c0_10 = arith.constant 0 : index
    %c0_11 = arith.constant 0 : index
    %31 = vector.load %arg5[%c0_10, %c0_11] : memref<32x96xbf16, #tpu.memory_space<vmem>>, vector<32x96xbf16>
    %cst_12 = arith.constant dense<0.000000e+00> : vector<8x96xf32>
    %32 = tpu.matmul %30, %31, %cst_12 {dimension_numbers = #tpu.dot_dimension_numbers<[1], [0], [0], [1], [0, 0, 1, 1], [], []>} : vector<8x32xbf16>, vector<32x96xbf16>, vector<8x96xf32> -> vector<8x96xf32>
    %c0_13 = arith.constant 0 : index
    %c0_14 = arith.constant 0 : index
    %33 = vector.load %arg6[%c0_13, %c0_14] : memref<1x96xf32, #tpu.memory_space<vmem>>, vector<1x96xf32>
    %34 = vector.shape_cast %33 : vector<1x96xf32> to vector<96xf32>
    %35 = vector.shape_cast %34 : vector<96xf32> to vector<1x96xf32>
    %36 = vector.broadcast %35 : vector<1x96xf32> to vector<8x96xf32>
    %37 = arith.addf %32, %36 : vector<8x96xf32>
    %38 = arith.truncf %37 : vector<8x96xf32> to vector<8x96xbf16>
    %39 = vector.extract_strided_slice %38 {offsets = [0, 0], sizes = [8, 8], strides = [1, 1]} : vector<8x96xbf16> to vector<8x8xbf16>
    %c0_15 = arith.constant 0 : index
    %c0_16 = arith.constant 0 : index
    %c0_17 = arith.constant 0 : index
    %c0_18 = arith.constant 0 : index
    %40 = vector.load %arg7[%c0_15, %c0_16, %c0_17, %c0_18] : memref<1x4x8x8xbf16, #tpu.memory_space<vmem>>, vector<1x1x8x8xbf16>
    %41 = vector.shape_cast %40 : vector<1x1x8x8xbf16> to vector<8x8xbf16>
    %42 = vector.shape_cast %39 : vector<8x8xbf16> to vector<1x1x8x8xbf16>
    tpu.vector_store %arg7[%c0_15, %c0_16, %c0_17, %c0_18], %42 {strides = array<i32>} : memref<1x4x8x8xbf16, #tpu.memory_space<vmem>>, vector<1x1x8x8xbf16>,
    %43 = vector.extract_strided_slice %38 {offsets = [0, 32], sizes = [8, 8], strides = [1, 1]} : vector<8x96xbf16> to vector<8x8xbf16>
    %c0_19 = arith.constant 0 : index
    %c0_20 = arith.constant 0 : index
    %c0_21 = arith.constant 0 : index
    %c0_22 = arith.constant 0 : index
    %44 = vector.load %arg8[%c0_19, %c0_20, %c0_21, %c0_22] : memref<1x4x8x8xbf16, #tpu.memory_space<vmem>>, vector<1x1x8x8xbf16>
    %45 = vector.shape_cast %44 : vector<1x1x8x8xbf16> to vector<8x8xbf16>
    %46 = vector.shape_cast %43 : vector<8x8xbf16> to vector<1x1x8x8xbf16>
    tpu.vector_store %arg8[%c0_19, %c0_20, %c0_21, %c0_22], %46 {strides = array<i32>} : memref<1x4x8x8xbf16, #tpu.memory_space<vmem>>, vector<1x1x8x8xbf16>,
    %47 = vector.extract_strided_slice %38 {offsets = [0, 64], sizes = [8, 8], strides = [1, 1]} : vector<8x96xbf16> to vector<8x8xbf16>
    %c0_23 = arith.constant 0 : index
    %c0_24 = arith.constant 0 : index
    %c0_25 = arith.constant 0 : index
    %c0_26 = arith.constant 0 : index
    %48 = vector.load %arg9[%c0_23, %c0_24, %c0_25, %c0_26] : memref<1x4x8x8xbf16, #tpu.memory_space<vmem>>, vector<1x1x8x8xbf16>
    %49 = vector.shape_cast %48 : vector<1x1x8x8xbf16> to vector<8x8xbf16>
    %50 = vector.shape_cast %47 : vector<8x8xbf16> to vector<1x1x8x8xbf16>
    tpu.vector_store %arg9[%c0_23, %c0_24, %c0_25, %c0_26], %50 {strides = array<i32>} : memref<1x4x8x8xbf16, #tpu.memory_space<vmem>>, vector<1x1x8x8xbf16>,
    %51 = vector.extract_strided_slice %38 {offsets = [0, 8], sizes = [8, 8], strides = [1, 1]} : vector<8x96xbf16> to vector<8x8xbf16>
    %c0_27 = arith.constant 0 : index
    %c1 = arith.constant 1 : index
    %c0_28 = arith.constant 0 : index
    %c0_29 = arith.constant 0 : index
    %52 = vector.load %arg7[%c0_27, %c1, %c0_28, %c0_29] : memref<1x4x8x8xbf16, #tpu.memory_space<vmem>>, vector<1x1x8x8xbf16>
    %53 = vector.shape_cast %52 : vector<1x1x8x8xbf16> to vector<8x8xbf16>
    %54 = vector.shape_cast %51 : vector<8x8xbf16> to vector<1x1x8x8xbf16>
    tpu.vector_store %arg7[%c0_27, %c1, %c0_28, %c0_29], %54 {strides = array<i32>} : memref<1x4x8x8xbf16, #tpu.memory_space<vmem>>, vector<1x1x8x8xbf16>,
    %55 = vector.extract_strided_slice %38 {offsets = [0, 40], sizes = [8, 8], strides = [1, 1]} : vector<8x96xbf16> to vector<8x8xbf16>
    %c0_30 = arith.constant 0 : index
    %c1_31 = arith.constant 1 : index
    %c0_32 = arith.constant 0 : index
    %c0_33 = arith.constant 0 : index
    %56 = vector.load %arg8[%c0_30, %c1_31, %c0_32, %c0_33] : memref<1x4x8x8xbf16, #tpu.memory_space<vmem>>, vector<1x1x8x8xbf16>
    %57 = vector.shape_cast %56 : vector<1x1x8x8xbf16> to vector<8x8xbf16>
    %58 = vector.shape_cast %55 : vector<8x8xbf16> to vector<1x1x8x8xbf16>
    tpu.vector_store %arg8[%c0_30, %c1_31, %c0_32, %c0_33], %58 {strides = array<i32>} : memref<1x4x8x8xbf16, #tpu.memory_space<vmem>>, vector<1x1x8x8xbf16>,
    %59 = vector.extract_strided_slice %38 {offsets = [0, 72], sizes = [8, 8], strides = [1, 1]} : vector<8x96xbf16> to vector<8x8xbf16>
    %c0_34 = arith.constant 0 : index
    %c1_35 = arith.constant 1 : index
    %c0_36 = arith.constant 0 : index
    %c0_37 = arith.constant 0 : index
    %60 = vector.load %arg9[%c0_34, %c1_35, %c0_36, %c0_37] : memref<1x4x8x8xbf16, #tpu.memory_space<vmem>>, vector<1x1x8x8xbf16>
    %61 = vector.shape_cast %60 : vector<1x1x8x8xbf16> to vector<8x8xbf16>
    %62 = vector.shape_cast %59 : vector<8x8xbf16> to vector<1x1x8x8xbf16>
    tpu.vector_store %arg9[%c0_34, %c1_35, %c0_36, %c0_37], %62 {strides = array<i32>} : memref<1x4x8x8xbf16, #tpu.memory_space<vmem>>, vector<1x1x8x8xbf16>,
    %63 = vector.extract_strided_slice %38 {offsets = [0, 16], sizes = [8, 8], strides = [1, 1]} : vector<8x96xbf16> to vector<8x8xbf16>
    %c0_38 = arith.constant 0 : index
    %c2 = arith.constant 2 : index
    %c0_39 = arith.constant 0 : index
    %c0_40 = arith.constant 0 : index
    %64 = vector.load %arg7[%c0_38, %c2, %c0_39, %c0_40] : memref<1x4x8x8xbf16, #tpu.memory_space<vmem>>, vector<1x1x8x8xbf16>
    %65 = vector.shape_cast %64 : vector<1x1x8x8xbf16> to vector<8x8xbf16>
    %66 = vector.shape_cast %63 : vector<8x8xbf16> to vector<1x1x8x8xbf16>
    tpu.vector_store %arg7[%c0_38, %c2, %c0_39, %c0_40], %66 {strides = array<i32>} : memref<1x4x8x8xbf16, #tpu.memory_space<vmem>>, vector<1x1x8x8xbf16>,
    %67 = vector.extract_strided_slice %38 {offsets = [0, 48], sizes = [8, 8], strides = [1, 1]} : vector<8x96xbf16> to vector<8x8xbf16>
    %c0_41 = arith.constant 0 : index
    %c2_42 = arith.constant 2 : index
    %c0_43 = arith.constant 0 : index
    %c0_44 = arith.constant 0 : index
    %68 = vector.load %arg8[%c0_41, %c2_42, %c0_43, %c0_44] : memref<1x4x8x8xbf16, #tpu.memory_space<vmem>>, vector<1x1x8x8xbf16>
    %69 = vector.shape_cast %68 : vector<1x1x8x8xbf16> to vector<8x8xbf16>
    %70 = vector.shape_cast %67 : vector<8x8xbf16> to vector<1x1x8x8xbf16>
    tpu.vector_store %arg8[%c0_41, %c2_42, %c0_43, %c0_44], %70 {strides = array<i32>} : memref<1x4x8x8xbf16, #tpu.memory_space<vmem>>, vector<1x1x8x8xbf16>,
    %71 = vector.extract_strided_slice %38 {offsets = [0, 80], sizes = [8, 8], strides = [1, 1]} : vector<8x96xbf16> to vector<8x8xbf16>
    %c0_45 = arith.constant 0 : index
    %c2_46 = arith.constant 2 : index
    %c0_47 = arith.constant 0 : index
    %c0_48 = arith.constant 0 : index
    %72 = vector.load %arg9[%c0_45, %c2_46, %c0_47, %c0_48] : memref<1x4x8x8xbf16, #tpu.memory_space<vmem>>, vector<1x1x8x8xbf16>
    %73 = vector.shape_cast %72 : vector<1x1x8x8xbf16> to vector<8x8xbf16>
    %74 = vector.shape_cast %71 : vector<8x8xbf16> to vector<1x1x8x8xbf16>
    tpu.vector_store %arg9[%c0_45, %c2_46, %c0_47, %c0_48], %74 {strides = array<i32>} : memref<1x4x8x8xbf16, #tpu.memory_space<vmem>>, vector<1x1x8x8xbf16>,
    %75 = vector.extract_strided_slice %38 {offsets = [0, 24], sizes = [8, 8], strides = [1, 1]} : vector<8x96xbf16> to vector<8x8xbf16>
    %c0_49 = arith.constant 0 : index
    %c3 = arith.constant 3 : index
    %c0_50 = arith.constant 0 : index
    %c0_51 = arith.constant 0 : index
    %76 = vector.load %arg7[%c0_49, %c3, %c0_50, %c0_51] : memref<1x4x8x8xbf16, #tpu.memory_space<vmem>>, vector<1x1x8x8xbf16>
    %77 = vector.shape_cast %76 : vector<1x1x8x8xbf16> to vector<8x8xbf16>
    %78 = vector.shape_cast %75 : vector<8x8xbf16> to vector<1x1x8x8xbf16>
    tpu.vector_store %arg7[%c0_49, %c3, %c0_50, %c0_51], %78 {strides = array<i32>} : memref<1x4x8x8xbf16, #tpu.memory_space<vmem>>, vector<1x1x8x8xbf16>,
    %79 = vector.extract_strided_slice %38 {offsets = [0, 56], sizes = [8, 8], strides = [1, 1]} : vector<8x96xbf16> to vector<8x8xbf16>
    %c0_52 = arith.constant 0 : index
    %c3_53 = arith.constant 3 : index
    %c0_54 = arith.constant 0 : index
    %c0_55 = arith.constant 0 : index
    %80 = vector.load %arg8[%c0_52, %c3_53, %c0_54, %c0_55] : memref<1x4x8x8xbf16, #tpu.memory_space<vmem>>, vector<1x1x8x8xbf16>
    %81 = vector.shape_cast %80 : vector<1x1x8x8xbf16> to vector<8x8xbf16>
    %82 = vector.shape_cast %79 : vector<8x8xbf16> to vector<1x1x8x8xbf16>
    tpu.vector_store %arg8[%c0_52, %c3_53, %c0_54, %c0_55], %82 {strides = array<i32>} : memref<1x4x8x8xbf16, #tpu.memory_space<vmem>>, vector<1x1x8x8xbf16>,
    %83 = vector.extract_strided_slice %38 {offsets = [0, 88], sizes = [8, 8], strides = [1, 1]} : vector<8x96xbf16> to vector<8x8xbf16>
    %c0_56 = arith.constant 0 : index
    %c3_57 = arith.constant 3 : index
    %c0_58 = arith.constant 0 : index
    %c0_59 = arith.constant 0 : index
    %84 = vector.load %arg9[%c0_56, %c3_57, %c0_58, %c0_59] : memref<1x4x8x8xbf16, #tpu.memory_space<vmem>>, vector<1x1x8x8xbf16>
    %85 = vector.shape_cast %84 : vector<1x1x8x8xbf16> to vector<8x8xbf16>
    %86 = vector.shape_cast %83 : vector<8x8xbf16> to vector<1x1x8x8xbf16>
    tpu.vector_store %arg9[%c0_56, %c3_57, %c0_58, %c0_59], %86 {strides = array<i32>} : memref<1x4x8x8xbf16, #tpu.memory_space<vmem>>, vector<1x1x8x8xbf16>,
    return
  }
  func.func @transform_0(%arg0: i32, %arg1: i32) -> (i32, i32, i32) {
    %c0_i32 = arith.constant 0 : i32
    %c0_i32_0 = arith.constant 0 : i32
    return %arg0, %arg1, %c0_i32 : i32, i32, i32
  }
  func.func @transform_1(%arg0: i32, %arg1: i32) -> (i32, i32) {
    %c0_i32 = arith.constant 0 : i32
    %c0_i32_0 = arith.constant 0 : i32
    %c0_i32_1 = arith.constant 0 : i32
    return %c0_i32, %c0_i32_0 : i32, i32
  }
  func.func @transform_2(%arg0: i32, %arg1: i32) -> (i32, i32) {
    %c0_i32 = arith.constant 0 : i32
    %c0_i32_0 = arith.constant 0 : i32
    %c0_i32_1 = arith.constant 0 : i32
    return %c0_i32, %c0_i32_0 : i32, i32
  }
  func.func @transform_3(%arg0: i32, %arg1: i32) -> (i32, i32) {
    %c0_i32 = arith.constant 0 : i32
    %c0_i32_0 = arith.constant 0 : i32
    %c0_i32_1 = arith.constant 0 : i32
    return %c0_i32, %c0_i32_0 : i32, i32
  }
  func.func @transform_4(%arg0: i32, %arg1: i32) -> (i32, i32) {
    %c0_i32 = arith.constant 0 : i32
    %c0_i32_0 = arith.constant 0 : i32
    %c0_i32_1 = arith.constant 0 : i32
    return %c0_i32, %c0_i32_0 : i32, i32
  }
  func.func @transform_5(%arg0: i32, %arg1: i32) -> (i32, i32, i32, i32) {
    %c0_i32 = arith.constant 0 : i32
    %c0_i32_0 = arith.constant 0 : i32
    %c0_i32_1 = arith.constant 0 : i32
    return %arg0, %c0_i32, %arg1, %c0_i32_0 : i32, i32, i32, i32
  }
  func.func @transform_6(%arg0: i32, %arg1: i32) -> (i32, i32, i32, i32) {
    %c0_i32 = arith.constant 0 : i32
    %c0_i32_0 = arith.constant 0 : i32
    %c0_i32_1 = arith.constant 0 : i32
    return %arg0, %c0_i32, %arg1, %c0_i32_0 : i32, i32, i32, i32
  }
  func.func @transform_7(%arg0: i32, %arg1: i32) -> (i32, i32, i32, i32) {
    %c0_i32 = arith.constant 0 : i32
    %c0_i32_0 = arith.constant 0 : i32
    %c0_i32_1 = arith.constant 0 : i32
    return %arg0, %c0_i32, %arg1, %c0_i32_0 : i32, i32, i32, i32
  }
}

</mosaic_0001>

<bundles_post_ra>
// kernel: tpu_custom_call.1
= control target key start
LH: loop header
LB: loop body
LE: loop exit
PB: predicated region body
PF: predicated region fallthrough
CT: control target
= control target key end

     0   :  { %s1743_s0 = inlined_call_operand.hbm [shape: f32[2,8,32], index: 0, kind: input, shape index: {}]   ;;  %s1744_s1 = inlined_call_operand.hbm [shape: f32[1,32], index: 1, kind: input, shape index: {}]   ;;  %s1745_s2 = inlined_call_operand.hbm [shape: f32[1,32], index: 2, kind: input, shape index: {}]   ;;  %s1746_s3 = inlined_call_operand.hbm [shape: bf16[32,96], index: 3, kind: input, shape index: {}]   ;;  %s1747_s4 = inlined_call_operand.hbm [shape: f32[1,96], index: 4, kind: input, shape index: {}]   ;;  %s1748_s5 = inlined_call_operand.hbm [shape: bf16[2,4,8,8], index: 5, kind: output, shape index: {0}]   ;;  %s1749_s6 = inlined_call_operand.hbm [shape: bf16[2,4,8,8], index: 6, kind: output, shape index: {1}]   ;;  %s1750_s7 = inlined_call_operand.hbm [shape: bf16[2,4,8,8], index: 7, kind: output, shape index: {2}]  }
   0x1   :  { %1755 = sst [smem:[#allocation20_spill]] %s1744_s1 }
   0x2   :  { %1756 = sst [smem:[#allocation21_spill]] %s1745_s2 }
   0x3   :  { %13 = vsyncpa [#allocation3], 0 }
   0x4   :  { %15 = vsyncpa [#allocation3 + $0x1], 0 }
   0x5   :  { %16 = vsyncpa [#allocation6], 0 }
   0x6   :  { %17 = vsyncpa [#allocation9], 0 }
   0x7   :  { %18 = vsyncpa [#allocation4], 0 }
   0x8   :  { %20 = vsyncpa [#allocation4 + $0x1], 0 }
   0x9   :  { %21 = vsyncpa [#allocation13], 0 }
   0xa   :  { %23 = vsyncpa [#allocation13 + $0x1], 0  ;;  %s1342_s24 = smov 0   ;;  %s1344_s25 = smov 0  }
   0xb   :  { %s1346_s26 = smov 0   ;;  %s1348_s27 = smov 0  }
   0xc   :  { %s1350_s28 = smov 0   ;;  %s1352_s29 = smov 0  }
   0xd LB: > { %s1373_s30 = sadd.s32 4294967295, %s1276_s29   ;;  %p792_p0 = scmp.ge.s32.totalorder %s1276_s29, 1  ;;  %s1276_s29 = sphi %s1352_s29, %s29_s29   ;;  %s1272_s28 = sphi %s1350_s28, %s1782_s28   ;;  %s1268_s27 = sphi %s1348_s27, %s1781_s27   ;;  %s1264_s26 = sphi %s1346_s26, %s1780_s26   ;;  %s1260_s25 = sphi %s1344_s25, %s1779_s25   ;;  %s1256_s24 = sphi %s1342_s24, %s1778_s24  }
   0xe   : > { %p1751_p1 = scmp.eq.s32.totalorder %s1373_s30, 0  ;;  %p242_p2 = scmp.lt.s32.totalorder %s1276_s29, 3 }
   0xf   : > { %s1278_s9 = smov [#allocation5]   ;;  %s1279_s11 = smov [#allocation8]  }
  0x10   : > { %p1378_p3 = pnand %p792_p0, %p242_p2  ;;  %s255_s10 = sshll.u32 %s1278_s9, 4  ;;  %s256_s10 = int_to_ptr.vmem [resolvable:$true] %s255_s10 }
  0x11   : > { %s276_s12 = sshll.u32 %s1279_s11, 4  ;;  %s1280_s14 = smov [#allocation7]   ;;  %s1391_s12 = int_to_ptr.vmem [resolvable:$true] %s276_s12 }
  0x12   : > { %s1757_s8 = scalar_select %p1378_p3, 1, 0 }
  0x13   : > { %p875_p5 = pneg %p1378_p3  ;;  %s1393_s15 = sshll.u32 %s1280_s14, 4  ;;  %s267_s15 = int_to_ptr.vmem [resolvable:$true] %s1393_s15 }
  0x14   : > { %s1759_s1 = sld [smem:[#allocation20_spill]] }
  0x15   : > { %p1387_p6 = pnand %p875_p5, %p1751_p1 }
  0x17   : > { %p1403_p8 = pneg %p1387_p6 }
  0x1a   : > { %s984_s18 = scalar_lea.hbm %s1759_s1, 16 }
  0x1b   : > { %p985_p7 = scmp.ne.s32.totalorder %s1759_s1, %s984_s18  ;;  %p991_p11 = scmp.lt.u32.totalorder %s984_s18, %s1759_s1 }
  0x1d   : > { %p987_p9 = pnand %p1403_p8, %p985_p7 }
  0x1f   : > { %p988_p10 = pneg %p987_p9 }
  0x21   : > { %p993_p12 = pnand %p991_p11, %p988_p10 }
  0x23   : > { %996 = shalt.err (!%p993_p12)
}
  0x24   : > { %s997_s9 = scalar_lea.vmem %s256_s10, 16  ;;  %s1004_s11 = scalar_lea.vmem %s256_s10, 32 }
  0x25   : > { %p998_p13 = scmp.ne.s32.totalorder %s256_s10, %s997_s9  ;;  %p1005_p5 = scmp.lt.s32.totalorder %s256_s10, %s256_s10 }
  0x26   : > { %p1006_p4 = scmp.lt.s32.totalorder %s1004_s11, %s997_s9 }
  0x27   : > { %p1000_p0 = pnand %p998_p13, %p1403_p8 }
  0x28   : > { %p1007_p1 = por %p1006_p4, %p1005_p5 }
  0x29   : > { %p1001_p2 = pneg %p1000_p0 }
  0x2b   : > { %p1008_p3 = pnand %p1007_p1, %p1001_p2 }
  0x2d   : > { %1011 = shalt.err (!%p1008_p3)
}
  0x2e   : > { %878 = dma.hbm_to_vmem [thread:$0]  (!%p1387_p6), %s1759_s1, 16, %s256_s10, [#allocation6]  }
  0x2f   : > { %s1012_s19 = scalar_lea.hbm %s1746_s3, 256 }
  0x30   : > { %p1013_p7 = scmp.ne.s32.totalorder %s1746_s3, %s1012_s19  ;;  %p1019_p1 = scmp.lt.u32.totalorder %s1012_s19, %s1746_s3 }
  0x32   : > { %p1015_p9 = pnand %p1013_p7, %p1403_p8 }
  0x34   : > { %p1016_p4 = pneg %p1015_p9 }
  0x36   : > { %p1021_p3 = pnand %p1019_p1, %p1016_p4 }
  0x38   : > { %1024 = shalt.err (!%p1021_p3)
}
  0x39   : > { %s1025_s10 = scalar_lea.vmem %s1391_s12, 256  ;;  %p1033_p13 = scmp.lt.s32.totalorder %s1391_s12, %s1391_s12 }
  0x3a   : > { %p1026_p10 = scmp.ne.s32.totalorder %s1391_s12, %s1025_s10  ;;  %p1034_p0 = scmp.lt.s32.totalorder %s1025_s10, %s1025_s10 }
  0x3c   : > { %p1028_p11 = pnand %p1026_p10, %p1403_p8  ;;  %p1035_p2 = por %p1034_p0, %p1033_p13 }
  0x3e   : > { %p1029_p12 = pneg %p1028_p11 }
  0x40   : > { %p1036_p5 = pnand %p1035_p2, %p1029_p12 }
  0x42   : > { %1039 = shalt.err (!%p1036_p5)
}
  0x43   : > { %s1281_s11 = smov 64   ;;  %s1282_s14 = smov 4  }
  0x44   : > { %884 = dma.hbm_to_vmem [thread:$0]  (!%p1387_p6), %s1746_s3, 256, %s1391_s12, [#allocation9], %s1281_s11, %s1281_s11, %s1282_s14  }
  0x45   : > { %s1761_s2 = sld [smem:[#allocation21_spill]] }
  0x4b   : > { %s1040_s20 = scalar_lea.hbm %s1761_s2, 16 }
  0x4c   : > { %p1041_p7 = scmp.ne.s32.totalorder %s1761_s2, %s1040_s20  ;;  %p1047_p1 = scmp.lt.u32.totalorder %s1040_s20, %s1761_s2 }
  0x4e   : > { %p1043_p9 = pnand %p1041_p7, %p1403_p8 }
  0x50   : > { %p1044_p4 = pneg %p1043_p9 }
  0x52   : > { %p1049_p3 = pnand %p1047_p1, %p1044_p4 }
  0x54   : > { %1052 = shalt.err (!%p1049_p3)
}
  0x55   : > { %s1053_s16 = scalar_lea.vmem %s267_s15, 16  ;;  %s1060_s12 = scalar_lea.vmem %s267_s15, 32 }
  0x56   : > { %p1054_p10 = scmp.ne.s32.totalorder %s267_s15, %s1053_s16  ;;  %p1061_p13 = scmp.lt.s32.totalorder %s267_s15, %s267_s15 }
  0x57   : > { %p1062_p0 = scmp.lt.s32.totalorder %s1060_s12, %s1053_s16 }
  0x58   : > { %p1056_p11 = pnand %p1054_p10, %p1403_p8 }
  0x59   : > { %p1063_p2 = por %p1062_p0, %p1061_p13 }
  0x5a   : > { %p1057_p12 = pneg %p1056_p11 }
  0x5c   : > { %p1064_p5 = pnand %p1063_p2, %p1057_p12 }
  0x5e   : > { %1067 = shalt.err (!%p1064_p5)
}
  0x5f   : > { %881 = dma.hbm_to_vmem [thread:$0]  (!%p1387_p6), %s1761_s2, 16, %s267_s15, [#allocation6]  }
  0x60   : > { %s1283_s17 = smov [#allocation10]   ;;  %s1068_s22 = scalar_lea.hbm %s1747_s4, 16 }
  0x61   : > { %s290_s18 = sshll.u32 %s1283_s17, 4  ;;  %p1069_p7 = scmp.ne.s32.totalorder %s1747_s4, %s1068_s22  ;;  %s291_s18 = int_to_ptr.vmem [resolvable:$true] %s290_s18 }
  0x62   : > { %p1075_p1 = scmp.lt.u32.totalorder %s1068_s22, %s1747_s4 }
  0x63   : > { %p1071_p9 = pnand %p1069_p7, %p1403_p8 }
  0x65   : > { %p1072_p4 = pneg %p1071_p9 }
  0x67   : > { %p1077_p3 = pnand %p1075_p1, %p1072_p4 }
  0x69   : > { %1080 = shalt.err (!%p1077_p3)
}
  0x6a   : > { %s1081_s15 = scalar_lea.vmem %s291_s18, 16  ;;  %s1088_s12 = scalar_lea.vmem %s291_s18, 32 }
  0x6b   : > { %p1082_p10 = scmp.ne.s32.totalorder %s291_s18, %s1081_s15  ;;  %p1089_p13 = scmp.lt.s32.totalorder %s291_s18, %s291_s18 }
  0x6c   : > { %p1090_p0 = scmp.lt.s32.totalorder %s1088_s12, %s1081_s15 }
  0x6d   : > { %p1084_p11 = pnand %p1082_p10, %p1403_p8 }
  0x6e   : > { %p1091_p2 = por %p1090_p0, %p1089_p13 }
  0x6f   : > { %p1085_p12 = pneg %p1084_p11 }
  0x71   : > { %p1092_p5 = pnand %p1091_p2, %p1085_p12 }
  0x73   : > { %1095 = shalt.err (!%p1092_p5)
}
  0x74   : > { %887 = dma.hbm_to_vmem [thread:$0]  (!%p1387_p6), %s1747_s4, 16, %s291_s18, [#allocation9]  }
  0x75   : > { %s1753_s21 = sadd.s32 4294967294, %s1276_s29   ;;  %s41_s17 = sadd.s32 1, %s1272_s28 }
  0x76   : > { %p43_p8 = scmp.ge.s32.totalorder %s41_s17, 2  ;;  %s50_s13 = sadd.s32 1, %s1264_s26 }
  0x77   : > { %p57_p7 = scmp.ne.s32.totalorder %s1264_s26, %s1260_s25  ;;  %p58_p9 = scmp.eq.s32.totalorder %s1276_s29, 0 }
  0x78   : > { %s1784_s17 = smov (%p43_p8, %s41_s17), 0  ;;  %p63_p1 = scmp.ne.s32.totalorder %s1260_s25, %s1256_s24 }
  0x79   : > { %p1487_p4 = por %p58_p9, %p57_p7  ;;  %s45_s18 = ssub.s32 %s1272_s28, %s1784_s17 }
  0x7a   : > { %p173_p6 = scmp.eq.s32.totalorder %s1373_s30, 1  ;;  %p48_p3 = scmp.eq.s32.totalorder %s45_s18, 0 }
  0x7b   : > { %p1763_p10 = scmp.eq.s32.totalorder %s1373_s30, 0  ;;  %p179_p13 = scmp.eq.s32.totalorder %s1753_s21, 1 }
  0x7c   : > { %p1502_p12 = por %p173_p6, %p57_p7  ;;  %p906_p2 = scmp.lt.s32.totalorder %s1276_s29, 2 }
  0x7d   : > { %p1498_p11 = por %p1763_p10, %p63_p1  ;;  %p1511_p0 = por %p179_p13, %p63_p1 }
  0x7e   : > { %s1765_s22 = scalar_select %p1502_p12, 1, 0 }
  0x7f   : > { %s1509_s23 = scalar_select %p48_p3, %s1264_s26, %s50_s13  }
  0x80   : > { %s1766_s9 = scalar_select %p1511_p0, 1, 0 }
  0x81   : > { %s301_s10 = sand.u32 1, %s1264_s26   ;;  %s799_s16 = sshll.u32 %s1272_s28, 7 }
  0x82   : > { %s798_s15 = sshll.u32 %s301_s10, 3  ;;  %s1521_s14 = scalar_lea.hbm %s1743_s0, %s799_s16 }
  0x83   : > { %s305_s18 = scalar_lea.vmem [#allocation2], %s798_s15  ;;  %p1525_p5 = pnand %p906_p2, %p1487_p4 }
  0x84   : > { %s313_s13 = sshll.u32 %s305_s18, 4  ;;  %s302_s1 = scalar_lea.sflag [#allocation3], %s301_s10  ;;  %s1529_s13 = int_to_ptr.vmem [resolvable:$true] %s313_s13 }
  0x85   : > { %s1096_s2 = scalar_lea.hbm %s1521_s14, 128  ;;  %p1098_p7 = pneg %p1525_p5 }
  0x86   : > { %p1097_p8 = scmp.ne.s32.totalorder %s1521_s14, %s1096_s2  ;;  %s1101_s19 = scalar_lea.hbm %s1743_s0, 256 }
  0x87   : > { %p1102_p4 = scmp.lt.u32.totalorder %s1521_s14, %s1743_s0  ;;  %p1103_p6 = scmp.lt.u32.totalorder %s1101_s19, %s1096_s2 }
  0x88   : > { %p1099_p9 = pnand %p1098_p7, %p1097_p8  ;;  %p1105_p10 = scmp.lt.u32.totalorder %s1096_s2, %s1521_s14 }
  0x89   : > { %p1104_p3 = por %p1103_p6, %p1102_p4 }
  0x8a   : > { %p1100_p1 = pneg %p1099_p9 }
  0x8b   : > { %p1106_p13 = por %p1105_p10, %p1104_p3 }
  0x8d   : > { %p1107_p2 = pnand %p1106_p13, %p1100_p1 }
  0x8f   : > { %1110 = shalt.err (!%p1107_p2)
}
  0x90   : > { %s1111_s10 = scalar_lea.vmem %s1529_s13, 128  ;;  %s1284_s18 = smov [#allocation2]  }
  0x91   : > { %p1112_p8 = scmp.ne.s32.totalorder %s1529_s13, %s1111_s10  ;;  %s1116_s16 = sshll.u32 %s1284_s18, 4  ;;  %s1117_s16 = int_to_ptr.vmem [resolvable:$false] %s1116_s16 }
  0x92   : > { %s1118_s15 = scalar_lea.vmem %s1117_s16, 256  ;;  %p1119_p12 = scmp.lt.s32.totalorder %s1529_s13, %s1117_s16 }
  0x93   : > { %p1114_p9 = pnand %p1112_p8, %p1098_p7  ;;  %p1120_p4 = scmp.lt.s32.totalorder %s1118_s15, %s1111_s10 }
  0x95   : > { %p1115_p0 = pneg %p1114_p9  ;;  %p1121_p6 = por %p1120_p4, %p1119_p12 }
  0x97   : > { %p1122_p3 = pnand %p1121_p6, %p1115_p0 }
  0x99   : > { %1125 = shalt.err (!%p1122_p3)
}
  0x9a   : > { %891 = dma.hbm_to_vmem [thread:$0]  (!%p1525_p5), %s1521_s14, 128, %s1529_s13, %s302_s1  }
  0x9b   : > { %p1768_p1 = scmp.ne.s32.totalorder %s1757_s8, 0 }
  0x9c   : > { %s1559_s2 = sand.u32 (!%p1768_p1), 1, %s1260_s25  }
  0x9d   : > { %322 = sbr.rel (%p1768_p1) target bundleno = 891 (0x37b), region = 40  ;;  %s801_s19 = sshll.u32 (!%p1768_p1), %s1559_s2, 3 }
  0x9e   : > { %s325_s12 = scalar_lea.sflag (!%p1768_p1), [#allocation3], %s1559_s2  ;;  %s328_s11 = scalar_lea.vmem (!%p1768_p1), [#allocation2], %s801_s19 }
  0xa4   : > { %1235 = dma.done.wait (%p1498_p11), %s325_s12, 128  }
  0xa5   : > { %1237 = vsyncadd (%p1498_p11), %s325_s12, 4294967168  ;;  %p1769_p12 = scmp.eq.s32.totalorder %s1373_s30, 0 }
  0xa7   : > { %1239 = dma.done.wait (%p1769_p12), [#allocation6], 32   ;;  %p1770_p0 = pmov %p1769_p12 }
  0xa9   : > { %1241 = vsyncadd (%p1770_p0), [#allocation6], 4294967264  ;;  %p1771_p5 = pmov %p1770_p0 }
  0xaa   : > { %p1772_p7 = pmov %p1770_p0 }
  0xab   : > { %1243 = dma.done.wait (%p1771_p5), [#allocation9], 272  }
  0xac   : > { %1245 = vsyncadd (%p1772_p7), [#allocation9], 4294967024  ;;  %vm389_vm0 = vcmask 261120   ;;  %v386_v0 = vld [vmem:[%s328_s11] sm:$0xff]  ;;  %v980_v7 = vld [vmem:[#allocation8] sm:$0xff]   ;;  %v1285_v8 = vmov 0.0  }
  0xad   : > { %v390_v1 = vsel %vm389_vm0, %v386_v0, 0.0  ;;  %843 = vmatprep.subr.bf16.mxu0 %v1285_v8  ;;  %vm1286_vm1 = vmmov 0   ;;  %v981_v9 = vld [vmem:[#allocation8 + $0x8] sm:$0xff]   ;;  %v809_v14 = vld [vmem:[#allocation5] ss:$0 sm:$0xff]  ;;  %s1579_s1 = sshll.u32 %s1559_s2, 4 }
  0xae   : > { %391 = vadd.xlane.f32.xlu0 %v390_v1  ;;  %847 = vmatprep.mubr.msk.bf16.mxu0 %vm1286_vm1, %v1285_v8  ;;  %v810_v16 = vld [vmem:[#allocation7] ss:$0 sm:$0xff]  ;;  %v811_v20 = vld [vmem:[#allocation10] ss:$0 sm:$0xff]  ;;  %vm486_vm2 = vcmask 60416   ;;  %s1287_s8 = smov 80  }
  0xaf   : > { %844 = vmatpush3.bf16.msra.mxu0 %v980_v7  ;;  %s1288_s21 = smov 96   ;;  %s1582_s20 = scalar_lea.vmem [#allocation11], %s1579_s1 }
  0xb0   : > { %845 = vmatprep.subr.bf16.mxu0 %v1285_v8  ;;  %s1289_s14 = smov 104   ;;  %s1290_s13 = smov 88  }
  0xb1   : > { %s1291_s10 = smov 72   ;;  %s1292_s18 = smov 64  }
  0xb2   : > { %s1293_s16 = smov 120   ;;  %s1294_s15 = smov 56  }
  0xb3   : > { %846 = vmatpush3.bf16.msra.mxu0 %v981_v9  ;;  %s1295_s19 = smov 112   ;;  %s1296_s12 = smov 48  }
  0xb4   : > { %s1297_s11 = smov 40   ;;  %p1773_p10 = scmp.ne.s32.totalorder %s1765_s22, 0 }
 0x13b   : > { %v392_v2 = vpop.xlane.xlu0 %391 }
 0x13c   : > { %v394_v3 = vmul.f32 0.03125, %v392_v2 }
 0x13e   : > { %v395_v4 = vsub.f32 %v386_v0, %v394_v3 }
 0x140   : > { %v396_v5 = vmul.f32 %v395_v4, %v395_v4 }
 0x142   : > { %v397_v6 = vsel %vm389_vm0, %v396_v5, 0.0 }
 0x143   : > { %398 = vadd.xlane.f32.xlu0 %v397_v6 }
 0x1d0   : > { %v399_v10 = vpop.xlane.xlu0 %398 }
 0x1d1   : > { %v400_v11 = vmul.f32 0.03125, %v399_v10 }
 0x1d3   : > { %v401_v12 = vadd.f32 1e-05, %v400_v11 }
 0x1d5   : > { %982 = vrsqrt.f32 %v401_v12 }
 0x1df   : > { %v983_v13 = vpop.eup %982 }
 0x1e0   : > { %v403_v15 = vmul.f32 %v983_v13, %v395_v4 }
 0x1e2   : > { %v410_v17 = vmul.f32 %v809_v14, %v403_v15 }
 0x1e4   : > { %v417_v18 = vadd.f32 %v810_v16, %v410_v17 }
 0x1e6   : > { %v418_v19 = vpack.c.bf16 %v417_v18, %v417_v18 }
 0x1e8   : > { %848 = vmatmul.mubr.msk.bf16.vlgmr.msra.gmra.mrb[0].mxu0 %vm389_vm0, %v418_v19 }
 0x2bb   : > { %v479_v21 = vpop.f32.mrb[0].mxu0 }
 0x2bc   : > { %v480_v22 = vadd.f32 %v811_v20, %v479_v21  ;;  %v849_v23 = vpop.f32.mrb[1].mxu0 }
 0x2bd   : > { %v482_v24 = vpop.f32.mrb[2].mxu0 }
 0x2be   : > { %v485_v25 = vpack.c.bf16 %v480_v22, %v480_v22  ;;  %v850_v26 = vpop.f32.mrb[3].mxu0 }
 0x2c0   : > { %519 = vrot.lane.b32.xlu0 %v485_v25, %s1287_s8  ;;  %491 = vrot.lane.b32.xlu1 %v485_v25, %s1288_s21  ;;  %487 = vst.msk [vmem:[%s1582_s20] sm:$0xf] %vm486_vm2, %v485_v25  ;;  %s377_s8 = scalar_lea.vmem [#allocation12], %s1579_s1 }
 0x2c1   : > { %s586_s21 = sshll.u32 %s377_s8, 4  ;;  %s1597_s21 = int_to_ptr.vmem [resolvable:$true] %s586_s21 }
 0x2c4   : > { %529 = vrot.lane.b32.xlu0 %v485_v25, %s1289_s14  ;;  %504 = vrot.lane.b32.xlu1 %v485_v25, %s1290_s13  ;;  %s549_s14 = sand.u32 1, %s1373_s30   ;;  %s1592_s13 = sshll.u32 %s1268_s27, 8 }
 0x2c5   : > { %s1606_s27 = scalar_lea.sflag [#allocation13], %s549_s14  ;;  %s1126_s30 = scalar_lea.vmem %s1597_s21, 256 }
 0x2c6   : > { %p1127_p11 = scmp.ne.s32.totalorder %s1597_s21, %s1126_s30 }
 0x2c8   : > { %534 = vrot.lane.b32.xlu1 %v485_v25, %s1291_s10  ;;  %p1128_p13 = pnand %p1127_p11, %p1773_p10 }
 0x2ca   : > { %p1129_p2 = pneg %p1128_p13 }
 0x2cc   : > { %495 = vrot.lane.b32.xlu1 %v485_v25, %s1292_s18 }
 0x2d0   : > { %499 = vrot.lane.b32.xlu1 %v485_v25, %s1293_s16 }
 0x2d4   : > { %509 = vrot.lane.b32.xlu1 %v485_v25, %s1294_s15  ;;  %s1603_s15 = scalar_lea.hbm %s1749_s6, %s1592_s13 }
 0x2d8   : > { %514 = vrot.lane.b32.xlu1 %v485_v25, %s1295_s19  ;;  %s1298_s19 = smov [#allocation12]  }
 0x2dc   : > { %524 = vrot.lane.b32.xlu1 %v485_v25, %s1296_s12  ;;  %s1130_s12 = sshll.u32 %s1298_s19, 4  ;;  %s1131_s12 = int_to_ptr.vmem [resolvable:$false] %s1130_s12 }
 0x2dd   : > { %p1133_p8 = scmp.lt.s32.totalorder %s1597_s21, %s1131_s12 }
 0x2e0   : > { %539 = vrot.lane.b32.xlu1 %v485_v25, %s1297_s11  ;;  %s1132_s11 = scalar_lea.vmem %s1131_s12, 512 }
 0x2e1   : > { %p1134_p9 = scmp.lt.s32.totalorder %s1132_s11, %s1126_s30 }
 0x2e3   : > { %p1135_p4 = por %p1134_p9, %p1133_p8 }
 0x2e5   : > { %p1136_p6 = pnand %p1135_p4, %p1129_p2 }
 0x332   : > { %v520_v27 = vpop.permute.xlu0 %519  ;;  %v492_v28 = vpop.permute.xlu1 %491 }
 0x333   : > { %820 = vst.msk [vmem:[%s377_s8 + $0x8] sm:$0xf] %vm486_vm2, %v520_v27  ;;  %494 = vst.msk [vmem:[%s377_s8] sm:$0xf] %vm486_vm2, %v492_v28 }
 0x336   : > { %v530_v29 = vpop.permute.xlu0 %529  ;;  %v505_v30 = vpop.permute.xlu1 %504 }
 0x337   : > { %822 = vst.msk [vmem:[%s1582_s20 + $0xc] sm:$0xf] %vm486_vm2, %v530_v29  ;;  %817 = vst.msk [vmem:[%s377_s8 + $0x4] sm:$0xf] %vm486_vm2, %v505_v30 }
 0x33a   : > { %v535_v31 = vpop.permute.xlu1 %534 }
 0x33b   : > { %823 = vst.msk [vmem:[%s377_s8 + $0xc] sm:$0xf] %vm486_vm2, %v535_v31 }
 0x33c   : > { %1139 = shalt.err (!%p1136_p6)
}
 0x33d   : > { %s1140_s8 = scalar_lea.hbm %s1603_s15, 256  ;;  %s1144_s16 = scalar_lea.hbm %s1749_s6, 512 }
 0x33e   : > { %p1141_p3 = scmp.ne.s32.totalorder %s1603_s15, %s1140_s8  ;;  %p1145_p0 = scmp.lt.u32.totalorder %s1603_s15, %s1749_s6 }
 0x33f   : > { %p1146_p5 = scmp.lt.u32.totalorder %s1144_s16, %s1140_s8  ;;  %p1148_p11 = scmp.lt.u32.totalorder %s1140_s8, %s1603_s15 }
 0x340   : > { %p1142_p1 = pnand %p1141_p3, %p1773_p10 }
 0x341   : > { %p1147_p7 = por %p1146_p5, %p1145_p0 }
 0x342   : > { %p1143_p12 = pneg %p1142_p1 }
 0x343   : > { %p1149_p13 = por %p1148_p11, %p1147_p7 }
 0x345   : > { %p1150_p2 = pnand %p1149_p13, %p1143_p12 }
 0x347   : > { %1153 = shalt.err (!%p1150_p2)
}
 0x348   : > { %s1299_s30 = smov 4   ;;  %v496_v32 = vpop.permute.xlu1 %495  ;;  %s1634_s11 = scalar_lea.vmem [#allocation14], %s1579_s1 }
 0x349   : > { %870 = dma.vmem_to_hbm [thread:$0]  (%p1773_p10), %s1597_s21, 256, %s1603_s15, %s1606_s27, %s1292_s18, %s1292_s18, %s1299_s30  }
 0x34a   : > { %498 = vst.msk [vmem:[%s1634_s11] sm:$0xf] %vm486_vm2, %v496_v32  ;;  %s569_s8 = sshll.u32 %s1582_s20, 4  ;;  %s1649_s1 = scalar_lea.hbm %s1748_s5, %s1592_s13  ;;  %s1643_s8 = int_to_ptr.vmem [resolvable:$true] %s569_s8 }
 0x34b   : > { %s1154_s15 = scalar_lea.vmem %s1643_s8, 256  ;;  %s1300_s16 = smov [#allocation11]  }
 0x34c   : > { %v500_v33 = vpop.permute.xlu1 %499  ;;  %p1155_p8 = scmp.ne.s32.totalorder %s1643_s8, %s1154_s15  ;;  %s1158_s19 = sshll.u32 %s1300_s16, 4  ;;  %s1159_s19 = int_to_ptr.vmem [resolvable:$false] %s1158_s19 }
 0x34d   : > { %816 = vst.msk [vmem:[%s1582_s20 + $0x4] sm:$0xf] %vm486_vm2, %v500_v33  ;;  %s1160_s12 = scalar_lea.vmem %s1159_s19, 512  ;;  %p1161_p6 = scmp.lt.s32.totalorder %s1643_s8, %s1159_s19 }
 0x34e   : > { %p1156_p9 = pnand %p1155_p8, %p1773_p10  ;;  %p1162_p3 = scmp.lt.s32.totalorder %s1160_s12, %s1154_s15 }
 0x350   : > { %v510_v34 = vpop.permute.xlu1 %509  ;;  %p1157_p4 = pneg %p1156_p9  ;;  %p1163_p1 = por %p1162_p3, %p1161_p6 }
 0x351   : > { %818 = vst.msk [vmem:[%s1634_s11 + $0x4] sm:$0xf] %vm486_vm2, %v510_v34 }
 0x352   : > { %p1164_p12 = pnand %p1163_p1, %p1157_p4 }
 0x354   : > { %v515_v35 = vpop.permute.xlu1 %514 }
 0x355   : > { %819 = vst.msk [vmem:[%s1582_s20 + $0x8] sm:$0xf] %vm486_vm2, %v515_v35 }
 0x356   : > { %1167 = shalt.err (!%p1164_p12)
}
 0x357   : > { %s1168_s20 = scalar_lea.hbm %s1649_s1, 256  ;;  %s1172_s16 = scalar_lea.hbm %s1748_s5, 512 }
 0x358   : > { %p1169_p0 = scmp.ne.s32.totalorder %s1649_s1, %s1168_s20  ;;  %p1173_p11 = scmp.lt.u32.totalorder %s1649_s1, %s1748_s5 }
 0x359   : > { %p1174_p13 = scmp.lt.u32.totalorder %s1172_s16, %s1168_s20  ;;  %p1176_p8 = scmp.lt.u32.totalorder %s1168_s20, %s1649_s1 }
 0x35a   : > { %p1170_p5 = pnand %p1169_p0, %p1773_p10 }
 0x35b   : > { %p1175_p2 = por %p1174_p13, %p1173_p11 }
 0x35c   : > { %p1171_p7 = pneg %p1170_p5 }
 0x35d   : > { %p1177_p9 = por %p1176_p8, %p1175_p2 }
 0x35f   : > { %p1178_p4 = pnand %p1177_p9, %p1171_p7 }
 0x361   : > { %1181 = shalt.err (!%p1178_p4)
}
 0x362   : > { %s1774_s15 = scalar_lea.sflag [#allocation4], %s1559_s2  ;;  %s603_s21 = sshll.u32 %s1634_s11, 4  ;;  %v525_v36 = vpop.permute.xlu1 %524  ;;  %s1683_s21 = int_to_ptr.vmem [resolvable:$true] %s603_s21 }
 0x363   : > { %869 = dma.vmem_to_hbm [thread:$0]  (%p1773_p10), %s1643_s8, 256, %s1649_s1, %s1774_s15, %s1292_s18, %s1292_s18, %s1299_s30  }
 0x364   : > { %821 = vst.msk [vmem:[%s1634_s11 + $0x8] sm:$0xf] %vm486_vm2, %v525_v36  ;;  %s1689_s2 = scalar_lea.hbm %s1750_s7, %s1592_s13  ;;  %s1182_s14 = scalar_lea.vmem %s1683_s21, 256 }
 0x365   : > { %p1183_p6 = scmp.ne.s32.totalorder %s1683_s21, %s1182_s14  ;;  %s1301_s8 = smov [#allocation14]  }
 0x366   : > { %v540_v37 = vpop.permute.xlu1 %539  ;;  %s1186_s1 = sshll.u32 %s1301_s8, 4  ;;  %s1187_s1 = int_to_ptr.vmem [resolvable:$false] %s1186_s1 }
 0x367   : > { %824 = vst.msk [vmem:[%s1634_s11 + $0xc] sm:$0xf] %vm486_vm2, %v540_v37  ;;  %p1184_p3 = pnand %p1183_p6, %p1773_p10  ;;  %s1188_s10 = scalar_lea.vmem %s1187_s1, 512 }
 0x368   : > { %p1189_p12 = scmp.lt.s32.totalorder %s1683_s21, %s1187_s1  ;;  %p1190_p0 = scmp.lt.s32.totalorder %s1188_s10, %s1182_s14 }
 0x369   : > { %p1185_p1 = pneg %p1184_p3 }
 0x36a   : > { %p1191_p5 = por %p1190_p0, %p1189_p12 }
 0x36c   : > { %p1192_p7 = pnand %p1191_p5, %p1185_p1 }
 0x36e   : > { %1195 = shalt.err (!%p1192_p7)
}
 0x36f   : > { %s1196_s13 = scalar_lea.hbm %s1689_s2, 256  ;;  %s1200_s19 = scalar_lea.hbm %s1750_s7, 512 }
 0x370   : > { %p1197_p11 = scmp.ne.s32.totalorder %s1689_s2, %s1196_s13  ;;  %p1201_p8 = scmp.lt.u32.totalorder %s1689_s2, %s1750_s7 }
 0x371   : > { %p1202_p9 = scmp.lt.u32.totalorder %s1200_s19, %s1196_s13  ;;  %p1204_p6 = scmp.lt.u32.totalorder %s1196_s13, %s1689_s2 }
 0x372   : > { %p1198_p13 = pnand %p1197_p11, %p1773_p10 }
 0x373   : > { %p1203_p4 = por %p1202_p9, %p1201_p8 }
 0x374   : > { %p1199_p2 = pneg %p1198_p13 }
 0x375   : > { %p1205_p3 = por %p1204_p6, %p1203_p4 }
 0x377   : > { %p1206_p1 = pnand %p1205_p3, %p1199_p2 }
 0x379   : > { %1209 = shalt.err (!%p1206_p1)
}
 0x37a   : > { %871 = dma.vmem_to_hbm [thread:$0]  (%p1773_p10), %s1683_s21, 256, %s1689_s2, %s1606_s27, %s1292_s18, %s1292_s18, %s1299_s30  }
 0x37b PF: > { %s618_s20 = sand.u32 1, %s1256_s24   ;;  %p1775_p12 = scmp.ne.s32.totalorder %s1766_s9, 0 }
 0x37c   : > { %p1776_p0 = scmp.ge.s32.totalorder %s1276_s29, 2  ;;  %s619_s14 = scalar_lea.sflag [#allocation4], %s618_s20 }
 0x37e   : > { %p893_p5 = pnand %p1776_p0, %p1775_p12 }
 0x380   : > { %1247 = dma.done.wait (!%p893_p5), %s619_s14, 256  }
 0x381   : > { %1249 = vsyncadd (!%p893_p5), %s619_s14, 4294967040  ;;  %s1777_s22 = sadd.s32 4294967294, %s1276_s29  }
 0x382   : > { %s627_s8 = sand.u32 1, %s1777_s22  }
 0x383   : > { %s628_s1 = scalar_lea.sflag [#allocation13], %s627_s8 }
 0x384   : > { %1251 = dma.done.wait (!%p893_p5), %s628_s1, 512  }
 0x385   : > { %1253 = vsyncadd (!%p893_p5), %s628_s1, 4294966784  ;;  %s29_s29 = sadd.s32 1, %s1276_s29   ;;  %s1778_s24 = smov %s1260_s25 }
 0x386   : > { %p26_p10 = scmp.ge.s32.totalorder %s29_s29, 4   ;;  %s1779_s25 = smov %s1264_s26 }
 0x387   : > { %s1780_s26 = smov %s1509_s23  ;;  %s1781_s27 = smov %s1272_s28 }
 0x388   : > { %s1782_s28 = smov %s1784_s17  ;;  %28 = sbr.rel (!%p26_p10) target bundleno = 13 (0xd), region = 142 }
 0x38f   :  { %642 = vsyncpa [#allocation3], 1 }
 0x390   :  { %644 = vsyncpa [#allocation3 + $0x1], 1 }
 0x391   :  { %645 = vsyncpa [#allocation6], 1 }
 0x392   :  { %646 = vsyncpa [#allocation9], 1 }
 0x393   :  { %647 = vsyncpa [#allocation4], 1 }
 0x394   :  { %649 = vsyncpa [#allocation4 + $0x1], 1 }
 0x395   :  { %650 = vsyncpa [#allocation13], 1 }
 0x396   :  { %652 = vsyncpa [#allocation13 + $0x1], 1 }

</bundles_post_ra>
